<compile_context>
chip_gen: v6e
topology: v6e:2x2x1
jax: 0.10.0
libtpu: 0.0.40
codegen_flags: <defaults>
</compile_context>

<pallas_src>
import functools

import jax
import jax.numpy as jnp
from jax import lax
from jax.experimental import pallas as pl
from jax.experimental.pallas import tpu as pltpu


MASK_VALUE = -1e30                    # finite "minus infinity" (NaN-safe when tiled)
VMEM_LIMIT = 32 * 1024 * 1024         # safe on v5e/v6e/v7x; re-derive tiles per gen


def _pick_tile(n, candidates=(256, 128)):
    """Largest preferred tile that divides n, else the full extent."""
    for t in candidates:
        if n % t == 0:
            return t
    return n


# ----------------------------------------------------------------------------
# Kernel A: LayerNorm (f32) + QKV projection (bf16 MXU inputs, f32 accumulate)
# ----------------------------------------------------------------------------
def _ln_qkv_kernel(x_ref, gamma_ref, beta_ref, wqkv_ref, qkv_ref, *, eps):
    x = x_ref[0]                                            # (ts, D) f32
    mean = jnp.mean(x, axis=-1, keepdims=True)
    var = jnp.mean((x - mean) * (x - mean), axis=-1, keepdims=True)
    xn = (x - mean) * lax.rsqrt(var + eps)                  # biased var, eps inside
    xn = xn * gamma_ref[0] + beta_ref[0]                    # (ts, D) f32
    qkv = jnp.dot(xn.astype(jnp.bfloat16), wqkv_ref[...],   # (D, 3*inner) bf16
                  preferred_element_type=jnp.float32)       # (ts, 3*inner) f32 acc
    qkv_ref[0] = qkv.astype(qkv_ref.dtype)


# ----------------------------------------------------------------------------
# Kernel B: causal flash attention, heads batched, online softmax over kv tiles
# ----------------------------------------------------------------------------
def _flash_attn_kernel(q_ref, k_ref, v_ref, o_ref, m_sc, l_sc, acc_sc,
                       *, scale, tq, tk):
    qi = pl.program_id(1)
    ki = pl.program_id(2)
    q_start = qi * tq
    k_start = ki * tk

    @pl.when(ki == 0)
    def _init():
        m_sc[...] = jnp.full(m_sc.shape, MASK_VALUE, dtype=m_sc.dtype)
        l_sc[...] = jnp.zeros(l_sc.shape, dtype=l_sc.dtype)
        acc_sc[...] = jnp.zeros(acc_sc.shape, dtype=acc_sc.dtype)

    # Skip kv tiles that lie entirely above the causal diagonal.
    @pl.when(k_start <= q_start + tq - 1)
    def _compute():
        q = q_ref[0]                                        # (H, tq, dh) bf16
        k = k_ref[0]                                        # (H, tk, dh) bf16
        v = v_ref[0]                                        # (H, tk, dh) bf16

        s = jnp.einsum('hqd,hkd->hqk', q, k,
                       preferred_element_type=jnp.float32) * scale   # (H,tq,tk) f32

        row = q_start + lax.broadcasted_iota(jnp.int32, (tq, tk), 0)
        col = k_start + lax.broadcasted_iota(jnp.int32, (tq, tk), 1)
        s = jnp.where((col <= row)[None, :, :], s, MASK_VALUE)

        m_prev = m_sc[...]                                  # (H, tq, 1)
        m_new = jnp.maximum(m_prev, jnp.max(s, axis=-1, keepdims=True))
        alpha = jnp.exp(m_prev - m_new)
        p = jnp.exp(s - m_new)                              # (H, tq, tk) f32
        l_sc[...] = alpha * l_sc[...] + jnp.sum(p, axis=-1, keepdims=True)
        acc_sc[...] = alpha * acc_sc[...] + jnp.einsum(
            'hqk,hkd->hqd', p.astype(v.dtype), v,
            preferred_element_type=jnp.float32)             # (H, tq, dh) f32
        m_sc[...] = m_new

    @pl.when(ki == pl.num_programs(2) - 1)
    def _finalize():
        inv_l = pl.reciprocal(l_sc[...], approx=True)       # EUP, ~free
        o_ref[0] = (acc_sc[...] * inv_l).astype(o_ref.dtype)


# ----------------------------------------------------------------------------
# Kernel C: output projection (bf16 MXU inputs, f32 accumulate) + bias
# ----------------------------------------------------------------------------
def _out_proj_kernel(a_ref, wout_ref, bout_ref, o_ref):
    o = jnp.dot(a_ref[0], wout_ref[...],                    # (ts,inner)@(inner,D)
                preferred_element_type=jnp.float32)
    o_ref[0] = (o + bout_ref[0]).astype(o_ref.dtype)


# ----------------------------------------------------------------------------
# Wrapper
# ----------------------------------------------------------------------------
def multi_head_attention(x, gamma, beta, w_qkv, w_out, b_out,
                         *, heads, dim_head, eps=1e-5):
    b, n, d = x.shape
    inner = heads * dim_head
    scale = float(dim_head) ** (-0.5)

    # Pre-transpose + bf16-cast weights ONCE at the XLA level (no in-kernel .T).
    w_qkv_t = w_qkv.T.astype(jnp.bfloat16)                  # (D, 3*inner)
    w_out_t = w_out.T.astype(jnp.bfloat16)                  # (inner, D)

    ts = _pick_tile(n)
    tq = tk = ts
    n_s = n // ts

    cp_2d = pltpu.CompilerParams(
        dimension_semantics=("parallel", "parallel"),
        vmem_limit_bytes=VMEM_LIMIT)

    # ---- Kernel A: LayerNorm + QKV projection ----
    ce_a = pl.CostEstimate(
        flops=2 * b * n * d * 3 * inner + 8 * b * n * d,
        transcendentals=b * n,
        bytes_accessed=4 * b * n * d + 2 * b * n * 3 * inner + 2 * d * 3 * inner)
    qkv = pl.pallas_call(
        functools.partial(_ln_qkv_kernel, eps=eps),
        out_shape=jax.ShapeDtypeStruct((b, n, 3 * inner), jnp.bfloat16),
        grid_spec=pltpu.PrefetchScalarGridSpec(
            num_scalar_prefetch=0,
            grid=(b, n_s),
            in_specs=[
                pl.BlockSpec((1, ts, d), lambda i, j: (i, j, 0)),      # x
                pl.BlockSpec((1, d), lambda i, j: (0, 0)),             # gamma
                pl.BlockSpec((1, d), lambda i, j: (0, 0)),             # beta
                pl.BlockSpec((d, 3 * inner), lambda i, j: (0, 0)),     # W_qkv^T (bf16)
            ],
            out_specs=pl.BlockSpec((1, ts, 3 * inner), lambda i, j: (i, j, 0)),
        ),
        compiler_params=cp_2d,
        cost_estimate=ce_a,
    )(x, gamma, beta, w_qkv_t)

    # ---- XLA layout plumbing: 'b n (h d)' -> 'b h n d' for q, k, v ----
    q, k, v = jnp.split(qkv, 3, axis=-1)

    def to_heads(t):
        return t.reshape(b, n, heads, dim_head).transpose(0, 2, 1, 3)

    q, k, v = to_heads(q), to_heads(k), to_heads(v)          # (B, H, N, dh) bf16

    # ---- Kernel B: causal flash attention ----
    ce_b = pl.CostEstimate(
        flops=4 * b * heads * n * n * dim_head,
        transcendentals=b * heads * n * n,
        bytes_accessed=4 * 2 * b * n * inner)
    o_heads = pl.pallas_call(
        functools.partial(_flash_attn_kernel, scale=scale, tq=tq, tk=tk),
        out_shape=jax.ShapeDtypeStruct((b, heads, n, dim_head), jnp.bfloat16),
        grid_spec=pltpu.PrefetchScalarGridSpec(
            num_scalar_prefetch=0,
            grid=(b, n // tq, n // tk),
            in_specs=[
                pl.BlockSpec((1, heads, tq, dim_head),
                             lambda i, qi, ki: (i, 0, qi, 0)),          # q
                pl.BlockSpec((1, heads, tk, dim_head),
                             lambda i, qi, ki: (i, 0, ki, 0)),          # k
                pl.BlockSpec((1, heads, tk, dim_head),
                             lambda i, qi, ki: (i, 0, ki, 0)),          # v
            ],
            out_specs=pl.BlockSpec((1, heads, tq, dim_head),
                                   lambda i, qi, ki: (i, 0, qi, 0)),
            scratch_shapes=[
                pltpu.VMEM((heads, tq, 1), jnp.float32),                # m
                pltpu.VMEM((heads, tq, 1), jnp.float32),                # l
                pltpu.VMEM((heads, tq, dim_head), jnp.float32),         # acc
            ],
        ),
        compiler_params=pltpu.CompilerParams(
            dimension_semantics=("parallel", "parallel", "arbitrary"),
            vmem_limit_bytes=VMEM_LIMIT),
        cost_estimate=ce_b,
    )(q, k, v)

    # ---- XLA layout plumbing: 'b h n d' -> 'b n (h d)' ----
    o_merged = o_heads.transpose(0, 2, 1, 3).reshape(b, n, inner)       # bf16

    # ---- Kernel C: output projection + bias ----
    ce_c = pl.CostEstimate(
        flops=2 * b * n * inner * d,
        transcendentals=0,
        bytes_accessed=2 * b * n * inner + 2 * inner * d + 4 * b * n * d)
    out = pl.pallas_call(
        _out_proj_kernel,
        out_shape=jax.ShapeDtypeStruct((b, n, d), x.dtype),
        grid_spec=pltpu.PrefetchScalarGridSpec(
            num_scalar_prefetch=0,
            grid=(b, n_s),
            in_specs=[
                pl.BlockSpec((1, ts, inner), lambda i, j: (i, j, 0)),   # attn out
                pl.BlockSpec((inner, d), lambda i, j: (0, 0)),          # W_out^T (bf16)
                pl.BlockSpec((1, d), lambda i, j: (0, 0)),              # b_out
            ],
            out_specs=pl.BlockSpec((1, ts, d), lambda i, j: (i, j, 0)),
        ),
        compiler_params=cp_2d,
        cost_estimate=ce_c,
    )(o_merged, w_out_t, b_out)

    return out
    # TODO(synk): with the module's toy dims (D=32, dim_head=8) the lane axis is
    # below 128 so stores are masked; at realistic dims (D, inner >= 128) the
    # same kernels become fully lane-dense.


# ----------------------------------------------------------------------------
# Pure-JAX reference mirroring the PyTorch forward (eval mode)
# ----------------------------------------------------------------------------
def _reference(x, gamma, beta, w_qkv, w_out, b_out, *, heads, dim_head, eps=1e-5):
    b, n, d = x.shape
    inner = heads * dim_head
    scale = float(dim_head) ** (-0.5)

    mean = jnp.mean(x, axis=-1, keepdims=True)
    var = jnp.mean((x - mean) ** 2, axis=-1, keepdims=True)
    xn = (x - mean) / jnp.sqrt(var + eps) * gamma + beta

    qkv = xn @ w_qkv.T
    q, k, v = jnp.split(qkv, 3, axis=-1)

    def to_heads(t):
        return t.reshape(b, n, heads, dim_head).transpose(0, 2, 1, 3)

    q, k, v = map(to_heads, (q, k, v))
    dots = jnp.einsum('bhid,bhjd->bhij', q, k) * scale
    mask = jnp.tril(jnp.ones((n, n), dtype=bool))
    dots = jnp.where(mask, dots, -jnp.inf)
    attn = jax.nn.softmax(dots, axis=-1)
    out = jnp.einsum('bhij,bhjd->bhid', attn, v)
    out = out.transpose(0, 2, 1, 3).reshape(b, n, inner)
    return out @ w_out.T + b_out


if __name__ == "__main__":
    # Small shapes consistent with the module: dim=32, heads=4, dim_head=8,
    # seq=8, batch=2 (max_len >= seq).
    B, N, D = 2, 8, 32
    HEADS, DIM_HEAD = 4, 8
    INNER = HEADS * DIM_HEAD

    key = jax.random.PRNGKey(0)
    kx, kq, ko, kb, kg, kbt = jax.random.split(key, 6)

    x = jax.random.normal(kx, (B, N, D), dtype=jnp.float32)

    # Deterministic synthetic parameters (shapes per nn.Module __init__).
    gamma = 1.0 + 0.1 * jax.random.normal(kg, (1, D), dtype=jnp.float32)
    beta = 0.1 * jax.random.normal(kbt, (1, D), dtype=jnp.float32)
    w_qkv = jax.random.normal(kq, (3 * INNER, D), dtype=jnp.float32) * 0.05
    w_out = jax.random.normal(ko, (D, INNER), dtype=jnp.float32) * 0.05
    b_out = jax.random.normal(kb, (1, D), dtype=jnp.float32) * 0.05

    out = multi_head_attention(x, gamma, beta, w_qkv, w_out, b_out,
                               heads=HEADS, dim_head=DIM_HEAD)
    out = jax.block_until_ready(out)

    ref = _reference(x, gamma[0], beta[0], w_qkv, w_out, b_out[0],
                     heads=HEADS, dim_head=DIM_HEAD)
    assert out.shape == (B, N, D)
    # bf16 MXU operands (f32 accumulation) vs all-f32 reference -> loosened tol.
    assert jnp.allclose(out, ref, atol=2e-2, rtol=2e-2), "mismatch vs reference"

    print("KERNEL_OK")
</pallas_src>

<mosaic_0001>
module attributes {stable_mosaic.version = 11 : i64} {
  func.func @_ln_qkv_kernel(%arg0: i32, %arg1: i32, %arg2: memref<1x8x32xf32, #tpu.memory_space<vmem>>, %arg3: memref<1x32xf32, #tpu.memory_space<vmem>>, %arg4: memref<1x32xf32, #tpu.memory_space<vmem>>, %arg5: memref<32x96xbf16, #tpu.memory_space<vmem>>, %arg6: memref<1x8x96xbf16, #tpu.memory_space<vmem>>) attributes {dimension_semantics = [#tpu.dimension_semantics<parallel>, #tpu.dimension_semantics<parallel>], iteration_bounds = array<i64: 2, 1>, scalar_prefetch = 0 : i64, scratch_operands = 0 : i64, tpu.core_type = #tpu.core_type<tc>, window_params = [{transform_indices = @transform_0, window_bounds = array<i64: 1, 8, 32>}, {pipeline_mode = #tpu.pipeline_mode<synchronous>, transform_indices = @transform_1, window_bounds = array<i64: 1, 32>}, {pipeline_mode = #tpu.pipeline_mode<synchronous>, transform_indices = @transform_2, window_bounds = array<i64: 1, 32>}, {pipeline_mode = #tpu.pipeline_mode<synchronous>, transform_indices = @transform_3, window_bounds = array<i64: 32, 96>}, {transform_indices = @transform_4, window_bounds = array<i64: 1, 8, 96>}]} {
    %c0 = arith.constant 0 : index
    %c0_0 = arith.constant 0 : index
    %c0_1 = arith.constant 0 : index
    %0 = vector.load %arg2[%c0, %c0_0, %c0_1] : memref<1x8x32xf32, #tpu.memory_space<vmem>>, vector<1x8x32xf32>
    %1 = vector.shape_cast %0 : vector<1x8x32xf32> to vector<8x32xf32>
    %cst = arith.constant dense<0.000000e+00> : vector<8xf32>
    %2 = vector.multi_reduction <add>, %1, %cst [1] : vector<8x32xf32> to vector<8xf32>
    %3 = vector.shape_cast %2 : vector<8xf32> to vector<8x1xf32>
    %cst_2 = arith.constant 3.200000e+01 : f32
    %4 = vector.broadcast %cst_2 : f32 to vector<8x1xf32>
    %5 = arith.divf %3, %4 : vector<8x1xf32>
    %6 = vector.broadcast %5 : vector<8x1xf32> to vector<8x32xf32>
    %7 = arith.subf %1, %6 : vector<8x32xf32>
    %8 = vector.broadcast %5 : vector<8x1xf32> to vector<8x32xf32>
    %9 = arith.subf %1, %8 : vector<8x32xf32>
    %10 = arith.mulf %7, %9 : vector<8x32xf32>
    %cst_3 = arith.constant dense<0.000000e+00> : vector<8xf32>
    %11 = vector.multi_reduction <add>, %10, %cst_3 [1] : vector<8x32xf32> to vector<8xf32>
    %12 = vector.shape_cast %11 : vector<8xf32> to vector<8x1xf32>
    %cst_4 = arith.constant 3.200000e+01 : f32
    %13 = vector.broadcast %cst_4 : f32 to vector<8x1xf32>
    %14 = arith.divf %12, %13 : vector<8x1xf32>
    %15 = vector.broadcast %5 : vector<8x1xf32> to vector<8x32xf32>
    %16 = arith.subf %1, %15 : vector<8x32xf32>
    %cst_5 = arith.constant 9.99999974E-6 : f32
    %17 = vector.broadcast %cst_5 : f32 to vector<8x1xf32>
    %18 = arith.addf %14, %17 : vector<8x1xf32>
    %19 = math.rsqrt %18 : vector<8x1xf32>
    %20 = vector.broadcast %19 : vector<8x1xf32> to vector<8x32xf32>
    %21 = arith.mulf %16, %20 : vector<8x32xf32>
    %c0_6 = arith.constant 0 : index
    %c0_7 = arith.constant 0 : index
    %22 = vector.load %arg3[%c0_6, %c0_7] : memref<1x32xf32, #tpu.memory_space<vmem>>, vector<1x32xf32>
    %23 = vector.shape_cast %22 : vector<1x32xf32> to vector<32xf32>
    %24 = vector.shape_cast %23 : vector<32xf32> to vector<1x32xf32>
    %25 = vector.broadcast %24 : vector<1x32xf32> to vector<8x32xf32>
    %26 = arith.mulf %21, %25 : vector<8x32xf32>
    %c0_8 = arith.constant 0 : index
    %c0_9 = arith.constant 0 : index
    %27 = vector.load %arg4[%c0_8, %c0_9] : memref<1x32xf32, #tpu.memory_space<vmem>>, vector<1x32xf32>
    %28 = vector.shape_cast %27 : vector<1x32xf32> to vector<32xf32>
    %29 = vector.shape_cast %28 : vector<32xf32> to vector<1x32xf32>
    %30 = vector.broadcast %29 : vector<1x32xf32> to vector<8x32xf32>
    %31 = arith.addf %26, %30 : vector<8x32xf32>
    %32 = arith.truncf %31 : vector<8x32xf32> to vector<8x32xbf16>
    %c0_10 = arith.constant 0 : index
    %c0_11 = arith.constant 0 : index
    %33 = vector.load %arg5[%c0_10, %c0_11] : memref<32x96xbf16, #tpu.memory_space<vmem>>, vector<32x96xbf16>
    %cst_12 = arith.constant dense<0.000000e+00> : vector<8x96xf32>
    %34 = tpu.matmul %32, %33, %cst_12 {dimension_numbers = #tpu.dot_dimension_numbers<[1], [0], [0], [1], [0, 0, 1, 1], [], []>} : vector<8x32xbf16>, vector<32x96xbf16>, vector<8x96xf32> -> vector<8x96xf32>
    %35 = arith.truncf %34 : vector<8x96xf32> to vector<8x96xbf16>
    %c0_13 = arith.constant 0 : index
    %c0_14 = arith.constant 0 : index
    %c0_15 = arith.constant 0 : index
    %36 = vector.load %arg6[%c0_13, %c0_14, %c0_15] : memref<1x8x96xbf16, #tpu.memory_space<vmem>>, vector<1x8x96xbf16>
    %37 = vector.shape_cast %36 : vector<1x8x96xbf16> to vector<8x96xbf16>
    %38 = vector.shape_cast %35 : vector<8x96xbf16> to vector<1x8x96xbf16>
    tpu.vector_store %arg6[%c0_13, %c0_14, %c0_15], %38 {strides = array<i32>} : memref<1x8x96xbf16, #tpu.memory_space<vmem>>, vector<1x8x96xbf16>,
    return
  }
  func.func @transform_0(%arg0: i32, %arg1: i32) -> (i32, i32, i32) {
    %c0_i32 = arith.constant 0 : i32
    %c0_i32_0 = arith.constant 0 : i32
    return %arg0, %arg1, %c0_i32 : i32, i32, i32
  }
  func.func @transform_1(%arg0: i32, %arg1: i32) -> (i32, i32) {
    %c0_i32 = arith.constant 0 : i32
    %c0_i32_0 = arith.constant 0 : i32
    %c0_i32_1 = arith.constant 0 : i32
    return %c0_i32, %c0_i32_0 : i32, i32
  }
  func.func @transform_2(%arg0: i32, %arg1: i32) -> (i32, i32) {
    %c0_i32 = arith.constant 0 : i32
    %c0_i32_0 = arith.constant 0 : i32
    %c0_i32_1 = arith.constant 0 : i32
    return %c0_i32, %c0_i32_0 : i32, i32
  }
  func.func @transform_3(%arg0: i32, %arg1: i32) -> (i32, i32) {
    %c0_i32 = arith.constant 0 : i32
    %c0_i32_0 = arith.constant 0 : i32
    %c0_i32_1 = arith.constant 0 : i32
    return %c0_i32, %c0_i32_0 : i32, i32
  }
  func.func @transform_4(%arg0: i32, %arg1: i32) -> (i32, i32, i32) {
    %c0_i32 = arith.constant 0 : i32
    %c0_i32_0 = arith.constant 0 : i32
    return %arg0, %arg1, %c0_i32 : i32, i32, i32
  }
}

</mosaic_0001>

<bundles_post_ra>
// kernel: tpu_custom_call.1
= control target key start
LH: loop header
LB: loop body
LE: loop exit
PB: predicated region body
PF: predicated region fallthrough
CT: control target
= control target key end

     0   :  { %s919_s0 = inlined_call_operand.hbm [shape: f32[2,8,32], index: 0, kind: input, shape index: {}]   ;;  %s920_s1 = inlined_call_operand.vmem [shape: f32[1,32], index: 1, kind: input, shape index: {}]   ;;  %s921_s2 = inlined_call_operand.vmem [shape: f32[1,32], index: 2, kind: input, shape index: {}]   ;;  %s922_s3 = inlined_call_operand.hbm [shape: bf16[32,96], index: 3, kind: input, shape index: {}]   ;;  %s923_s4 = inlined_call_operand.hbm [shape: bf16[2,8,96], index: 4, kind: output, shape index: {}]  }
   0x1   :  { %925 = sst [smem:[#allocation11_spill]] %s922_s3 }
   0x2   :  { %9 = vsyncpa [#allocation3], 0 }
   0x3   :  { %11 = vsyncpa [#allocation3 + $0x1], 0 }
   0x4   :  { %12 = vsyncpa [#allocation6], 0 }
   0x5   :  { %13 = vsyncpa [#allocation4], 0 }
   0x6   :  { %15 = vsyncpa [#allocation4 + $0x1], 0  ;;  %s730_s15 = smov 0   ;;  %s732_s16 = smov 0  }
   0x7   :  { %s734_s17 = smov 0   ;;  %s736_s18 = smov 0  }
   0x8   :  { %s738_s19 = smov 0   ;;  %s740_s20 = smov 0  }
   0x9 LB: > { %s446_s21 = sadd.s32 4294967295, %s696_s20   ;;  %s447_s22 = sadd.s32 4294967294, %s696_s20   ;;  %s696_s20 = sphi %s740_s20, %s21_s20   ;;  %s692_s19 = sphi %s738_s19, %s943_s19   ;;  %s688_s18 = sphi %s736_s18, %s942_s18   ;;  %s684_s17 = sphi %s734_s17, %s941_s17   ;;  %s680_s16 = sphi %s732_s16, %s940_s16   ;;  %s676_s15 = sphi %s730_s15, %s939_s15  }
   0xa   : > { %p55_p0 = scmp.ne.s32.totalorder %s680_s16, %s676_s15  ;;  %p764_p1 = scmp.eq.s32.totalorder %s446_s21, 0 }
   0xb   : > { %p768_p2 = scmp.eq.s32.totalorder %s446_s21, 1  ;;  %p150_p3 = scmp.eq.s32.totalorder %s447_s22, 1 }
   0xc   : > { %p774_p4 = por %p764_p1, %p55_p0  ;;  %p448_p5 = scmp.ge.s32.totalorder %s696_s20, 1 }
   0xd   : > { %p779_p6 = por %p150_p3, %p55_p0  ;;  %p157_p7 = scmp.lt.s32.totalorder %s696_s20, 3 }
   0xe   : > { %s928_s25 = scalar_select %p774_p4, 1, 0 }
   0xf   : > { %s929_s26 = scalar_select %p779_p6, 1, 0 }
  0x10   : > { %p784_p8 = pnand %p448_p5, %p157_p7  ;;  %s698_s28 = smov [#allocation5]  }
  0x11   : > { %s175_s29 = sshll.u32 %s698_s28, 4  ;;  %s33_s5 = sadd.s32 1, %s692_s19  ;;  %s176_s29 = int_to_ptr.vmem [resolvable:$true] %s175_s29 }
  0x12   : > { %p485_p9 = pneg %p784_p8  ;;  %s569_s6 = scalar_lea.vmem %s176_s29, 256 }
  0x13   : > { %p570_p13 = scmp.ne.s32.totalorder %s176_s29, %s569_s6  ;;  %p577_p5 = scmp.lt.s32.totalorder %s176_s29, %s176_s29 }
  0x14   : > { %p793_p11 = pnand %p485_p9, %p764_p1  ;;  %p578_p7 = scmp.lt.s32.totalorder %s569_s6, %s569_s6 }
  0x16   : > { %p560_p12 = pneg %p793_p11  ;;  %p579_p6 = por %p578_p7, %p577_p5 }
  0x18   : > { %p572_p0 = pnand %p570_p13, %p560_p12 }
  0x1a   : > { %p573_p3 = pneg %p572_p0 }
  0x1c   : > { %p580_p4 = pnand %p579_p6, %p573_p3 }
  0x1e   : > { %583 = shalt.err (!%p580_p4)
}
  0x1f   : > { %s699_s7 = smov 64   ;;  %s700_s8 = smov 4  }
  0x20   : > { %s932_s3 = sld [smem:[#allocation11_spill]]  ;;  %p35_p6 = scmp.ge.s32.totalorder %s33_s5, 2 }
  0x21   : > { %s42_s11 = sadd.s32 1, %s684_s17  ;;  %p49_p4 = scmp.ne.s32.totalorder %s684_s17, %s680_s16 }
  0x22   : > { %p50_p9 = scmp.eq.s32.totalorder %s696_s20, 0  ;;  %s945_s5 = smov (%p35_p6, %s33_s5), 0 }
  0x23   : > { %p817_p13 = por %p768_p2, %p49_p4  ;;  %s37_s14 = ssub.s32 %s692_s19, %s945_s5 }
  0x24   : > { %p811_p12 = por %p50_p9, %p49_p4  ;;  %p498_p0 = scmp.lt.s32.totalorder %s696_s20, 2 }
  0x25   : > { %s189_s21 = sand.u32 1, %s684_s17  }
  0x26   : > { %488 = dma.hbm_to_vmem [thread:$0]  (!%p793_p11), %s932_s3, 256, %s176_s29, [#allocation6], %s699_s7, %s699_s7, %s700_s8  }
  0x27   : > { %p40_p11 = scmp.eq.s32.totalorder %s37_s14, 0  ;;  %s451_s22 = sshll.u32 %s189_s21, 3 }
  0x28   : > { %s452_s29 = sshll.u32 %s692_s19, 7  ;;  %s193_s8 = scalar_lea.vmem [#allocation2], %s451_s22 }
  0x29   : > { %s826_s28 = scalar_select %p40_p11, %s684_s17, %s42_s11  }
  0x2a   : > { %s199_s7 = scalar_lea.hbm %s919_s0, %s452_s29  ;;  %s201_s9 = sshll.u32 %s193_s8, 4  ;;  %s202_s9 = int_to_ptr.vmem [resolvable:$true] %s201_s9 }
  0x2b   : > { %p834_p2 = pnand %p498_p0, %p811_p12  ;;  %s190_s10 = scalar_lea.sflag [#allocation3], %s189_s21 }
  0x2c   : > { %s597_s14 = scalar_lea.vmem %s202_s9, 128  ;;  %s701_s11 = smov [#allocation2]  }
  0x2d   : > { %p586_p3 = pneg %p834_p2  ;;  %p598_p5 = scmp.ne.s32.totalorder %s202_s9, %s597_s14 }
  0x2e   : > { %s602_s3 = sshll.u32 %s701_s11, 4  ;;  %s603_s3 = int_to_ptr.vmem [resolvable:$false] %s602_s3 }
  0x2f   : > { %p600_p7 = pnand %p598_p5, %p586_p3  ;;  %s604_s29 = scalar_lea.vmem %s603_s3, 256 }
  0x30   : > { %p605_p4 = scmp.lt.s32.totalorder %s202_s9, %s603_s3  ;;  %p606_p9 = scmp.lt.s32.totalorder %s604_s29, %s597_s14 }
  0x31   : > { %p601_p6 = pneg %p600_p7 }
  0x32   : > { %p607_p11 = por %p606_p9, %p605_p4 }
  0x34   : > { %p608_p10 = pnand %p607_p11, %p601_p6 }
  0x36   : > { %611 = shalt.err (!%p608_p10)
}
  0x37   : > { %492 = dma.hbm_to_vmem [thread:$0]  (!%p834_p2), %s199_s7, 128, %s202_s9, %s190_s10  }
  0x38   : > { %210 = sbr.rel (%p784_p8) target bundleno = 584 (0x248), region = 36  ;;  %s845_s12 = sand.u32 (!%p784_p8), 1, %s680_s16  }
  0x39   : > { %s454_s21 = sshll.u32 (!%p784_p8), %s845_s12, 3  ;;  %s213_s22 = scalar_lea.sflag (!%p784_p8), [#allocation3], %s845_s12 }
  0x3a   : > { %s216_s30 = scalar_lea.vmem (!%p784_p8), [#allocation2], %s454_s21  ;;  %p936_p12 = scmp.ne.s32.totalorder (!%p784_p8), %s928_s25, 0 }
  0x3d   : > { %663 = dma.done.wait (%p936_p12), %s213_s22, 128  }
  0x3e   : > { %665 = vsyncadd (%p936_p12), %s213_s22, 4294967168 }
  0x3f   : > { %667 = dma.done.wait (%p764_p1), [#allocation6], 256  }
  0x40   : > { %669 = vsyncadd (%p764_p1), [#allocation6], 4294967040  ;;  %vm247_vm0 = vcmask 261120   ;;  %v246_v0 = vld [vmem:[%s216_s30] sm:$0xff]  ;;  %v554_v7 = vld [vmem:[#allocation5 + $0x8] sm:$0xff]   ;;  %v702_v8 = vmov 0.0  }
  0x41   : > { %v248_v1 = vsel %vm247_vm0, %v246_v0, 0.0  ;;  %469 = vmatprep.subr.bf16.mxu0 %v702_v8  ;;  %vm703_vm1 = vmmov 0   ;;  %v555_v9 = vld [vmem:[#allocation5] sm:$0xff]   ;;  %v457_v14 = vld [vmem:[%s920_s1] ss:$0 sm:$0xff]  ;;  %s456_s6 = sshll.u32 %s845_s12, 2 }
  0x42   : > { %249 = vadd.xlane.f32.xlu0 %v248_v1  ;;  %473 = vmatprep.mubr.msk.bf16.mxu0 %vm703_vm1, %v702_v8  ;;  %v458_v16 = vld [vmem:[%s921_s2] ss:$0 sm:$0xff]  ;;  %s463_s7 = sshll.u32 %s688_s18, 6  ;;  %s244_s8 = scalar_lea.vmem [#allocation7], %s456_s6  ;;  %vm339_vm2 = vcmask 781312  }
  0x43   : > { %470 = vmatpush3.bf16.msra.mxu0 %v554_v7  ;;  %s356_s9 = sshll.u32 %s244_s8, 4  ;;  %s871_s14 = scalar_lea.hbm %s923_s4, %s463_s7  ;;  %s873_s9 = int_to_ptr.vmem [resolvable:$true] %s356_s9 }
  0x44   : > { %471 = vmatprep.subr.bf16.mxu0 %v702_v8  ;;  %s342_s11 = scalar_lea.sflag [#allocation4], %s845_s12  ;;  %s612_s18 = scalar_lea.vmem %s873_s9, 64 }
  0x45   : > { %p613_p1 = scmp.ne.s32.totalorder %s873_s9, %s612_s18  ;;  %s704_s29 = smov [#allocation7]  }
  0x46   : > { %s616_s21 = sshll.u32 %s704_s29, 4  ;;  %s617_s21 = int_to_ptr.vmem [resolvable:$false] %s616_s21 }
  0x47   : > { %472 = vmatpush3.bf16.msra.mxu0 %v555_v9  ;;  %p614_p8 = pnand %p613_p1, %p817_p13  ;;  %s618_s22 = scalar_lea.vmem %s617_s21, 128 }
  0x48   : > { %p619_p0 = scmp.lt.s32.totalorder %s873_s9, %s617_s21  ;;  %p620_p2 = scmp.lt.s32.totalorder %s618_s22, %s612_s18 }
  0x49   : > { %p615_p10 = pneg %p614_p8 }
  0x4a   : > { %p621_p3 = por %p620_p2, %p619_p0 }
  0x4c   : > { %p622_p5 = pnand %p621_p3, %p615_p10 }
  0xcb   : > { %v250_v2 = vpop.xlane.xlu0 %249 }
  0xcc   : > { %v252_v3 = vmul.f32 0.03125, %v250_v2 }
  0xce   : > { %v253_v4 = vsub.f32 %v246_v0, %v252_v3 }
  0xd0   : > { %v254_v5 = vmul.f32 %v253_v4, %v253_v4 }
  0xd2   : > { %v255_v6 = vsel %vm247_vm0, %v254_v5, 0.0 }
  0xd3   : > { %256 = vadd.xlane.f32.xlu0 %v255_v6 }
 0x15c   : > { %v257_v10 = vpop.xlane.xlu0 %256 }
 0x15d   : > { %v258_v11 = vmul.f32 0.03125, %v257_v10 }
 0x15f   : > { %v259_v12 = vadd.f32 1e-05, %v258_v11 }
 0x161   : > { %556 = vrsqrt.f32 %v259_v12 }
 0x16e   : > { %v557_v13 = vpop.eup %556 }
 0x16f   : > { %v261_v15 = vmul.f32 %v557_v13, %v253_v4 }
 0x171   : > { %v269_v17 = vmul.f32 %v457_v14, %v261_v15 }
 0x173   : > { %v277_v18 = vadd.f32 %v458_v16, %v269_v17 }
 0x175   : > { %v278_v19 = vpack.c.bf16 %v277_v18, %v277_v18 }
 0x177   : > { %474 = vmatmul.mubr.msk.bf16.vlgmr.msra.gmra.mxu0 %vm247_vm0, %v278_v19 }
 0x237   : > { %v332_v20 = vpop.f32.mrf.mxu0 }
 0x238   : > { %v338_v21 = vpack.c.bf16 %v332_v20, %v332_v20 }
 0x239   : > { %v475_v22 = vpop.f32.mrf.mxu0 }
 0x23a   : > { %340 = vst.msk [vmem:[%s244_s8] sm:$0xf] %vm339_vm2, %v338_v21 }
 0x23b   : > { %v335_v23 = vpop.f32.mrf.mxu0 }
 0x23c   : > { %625 = shalt.err (!%p622_p5)
}
 0x23d   : > { %s626_s30 = scalar_lea.hbm %s871_s14, 64  ;;  %s630_s23 = scalar_lea.hbm %s923_s4, 128 }
 0x23e   : > { %p627_p7 = scmp.ne.s32.totalorder %s871_s14, %s626_s30  ;;  %p631_p9 = scmp.lt.s32.totalorder %s871_s14, %s923_s4 }
 0x23f   : > { %p632_p11 = scmp.lt.s32.totalorder %s630_s23, %s626_s30 }
 0x240   : > { %p628_p6 = pnand %p627_p7, %p817_p13 }
 0x241   : > { %p633_p12 = por %p632_p11, %p631_p9 }
 0x242   : > { %p629_p4 = pneg %p628_p6 }
 0x244   : > { %p634_p1 = pnand %p633_p12, %p629_p4 }
 0x246   : > { %637 = shalt.err (!%p634_p1)
}
 0x247   : > { %483 = dma.vmem_to_hbm [thread:$0]  (%p817_p13), %s873_s9, 64, %s871_s14, %s342_s11   ;;  %v476_v24 = vpop.f32.mrf.mxu0 }
 0x248 PF: > { %s368_s6 = sand.u32 1, %s676_s15   ;;  %p937_p8 = scmp.ne.s32.totalorder %s929_s26, 0 }
 0x249   : > { %p938_p10 = scmp.ge.s32.totalorder %s696_s20, 2  ;;  %s369_s7 = scalar_lea.sflag [#allocation4], %s368_s6 }
 0x24b   : > { %p494_p0 = pnand %p938_p10, %p937_p8 }
 0x24d   : > { %p495_p2 = pneg %p494_p0 }
 0x24f   : > { %671 = dma.done.wait (%p495_p2), %s369_s7, 64  }
 0x250   : > { %673 = vsyncadd (%p495_p2), %s369_s7, 4294967232  ;;  %s21_s20 = sadd.s32 1, %s696_s20   ;;  %s939_s15 = smov %s680_s16 }
 0x251   : > { %p18_p3 = scmp.ge.s32.totalorder %s21_s20, 4   ;;  %s940_s16 = smov %s684_s17 }
 0x252   : > { %s941_s17 = smov %s826_s28  ;;  %s942_s18 = smov %s692_s19 }
 0x253   : > { %s943_s19 = smov %s945_s5  ;;  %20 = sbr.rel (!%p18_p3) target bundleno = 9 (0x9), region = 85 }
 0x258   :  { %374 = vsyncpa [#allocation3], 1 }
 0x259   :  { %376 = vsyncpa [#allocation3 + $0x1], 1 }
 0x25a   :  { %377 = vsyncpa [#allocation6], 1 }
 0x25b   :  { %378 = vsyncpa [#allocation4], 1 }
 0x25c   :  { %380 = vsyncpa [#allocation4 + $0x1], 1 }

</bundles_post_ra>
